<compile_context>
chip_gen: v7x
topology: tpu7x:2x2x1
jax: 0.10.0
libtpu: 0.0.40
codegen_flags: <defaults>
</compile_context>

<pallas_src>
import math

import jax
import jax.numpy as jnp
from jax.experimental import pallas as pl
from jax.experimental.pallas import tpu as pltpu


def _round_up(n: int, m: int) -> int:
    return ((n + m - 1) // m) * m


def _mlp_kernel(xT_ref, w1_ref, b1_ref, w2_ref, b2_ref, w3_ref, b3_ref, oT_ref):
    # Whole MLP fused per batch tile: intermediates never leave VMEM/vregs.
    # Matmuls run in the compute dtype (bf16 or f32) with f32 MXU accumulation;
    # bias-add / ReLU / final store are f32.
    cdt = w1_ref.dtype
    h1 = jnp.dot(w1_ref[...], xT_ref[...], preferred_element_type=jnp.float32)
    h1 = jnp.maximum(h1 + b1_ref[...], 0.0)                       # (12, tile_b)
    h2 = jnp.dot(w2_ref[...], h1.astype(cdt), preferred_element_type=jnp.float32)
    h2 = jnp.maximum(h2 + b2_ref[...], 0.0)                       # (6, tile_b)
    out = jnp.dot(w3_ref[...], h2.astype(cdt), preferred_element_type=jnp.float32)
    oT_ref[...] = (out + b3_ref[...]).astype(oT_ref.dtype)        # (out_dim, tile_b)


def linear_nn_forward(x, params, *, tile_b: int = 1024, matmul_dtype=jnp.bfloat16):
    """Pallas forward for LinearNeuralNetwork.

    x: (batch, input_dim) f32
    params: PyTorch-convention parameters:
        w1 (12, input_dim), b1 (12,)
        w2 (6, 12),         b2 (6,)
        w3 (out_dim, 6),    b3 (out_dim,)
    tile_b: batch-tile (lane) width per grid step; rounded to a multiple of 128.
    matmul_dtype: dtype of the MXU operands (bf16 halves HBM read traffic on
        v6e/v7x; accumulation and element-wise work stay f32).
    """
    batch, input_dim = x.shape
    out_dim = params["w3"].shape[0]

    # Batch is the lane axis: tile it in multiples of 128 lanes and pad.
    tile_b = max(128, _round_up(min(tile_b, _round_up(batch, 128)), 128))
    batch_p = _round_up(batch, tile_b)
    grid = (batch_p // tile_b,)

    # Layout plumbing (fused by XLA with the dtype cast): transpose so batch is
    # the minor/lane dim -> every kernel load/store is lane-dense.
    x_p = jnp.pad(x, ((0, batch_p - batch), (0, 0))) if batch_p != batch else x
    xT = x_p.T.astype(matmul_dtype)                        # (input_dim, batch_p)

    # PyTorch (out_features, in_features) weights are already in the
    # orientation the transposed compute wants -> no weight transposes.
    w1 = params["w1"].astype(matmul_dtype)                 # (12, input_dim)
    w2 = params["w2"].astype(matmul_dtype)                 # (6, 12)
    w3 = params["w3"].astype(matmul_dtype)                 # (out_dim, 6)
    b1 = params["b1"].astype(jnp.float32).reshape(-1, 1)   # (12, 1)
    b2 = params["b2"].astype(jnp.float32).reshape(-1, 1)   # (6, 1)
    b3 = params["b3"].astype(jnp.float32).reshape(-1, 1)   # (out_dim, 1)
    consts = (w1, b1, w2, b2, w3, b3)

    cost = pl.CostEstimate(
        flops=2 * batch_p * (input_dim * 12 + 12 * 6 + 6 * out_dim),
        transcendentals=0,
        bytes_accessed=int(xT.size) * xT.dtype.itemsize
        + out_dim * batch_p * 4
        + sum(int(a.size) * a.dtype.itemsize for a in consts),
    )

    outT = pl.pallas_call(
        _mlp_kernel,
        out_shape=jax.ShapeDtypeStruct((out_dim, batch_p), jnp.float32),
        grid=grid,
        in_specs=[
            # x^T tiled along batch -> double-buffered by the Pallas pipeline.
            pl.BlockSpec((input_dim, tile_b), lambda i: (0, i)),
            # Tiny weights/biases: constant index_maps -> VMEM-resident.
            pl.BlockSpec(w1.shape, lambda i: (0, 0)),
            pl.BlockSpec(b1.shape, lambda i: (0, 0)),
            pl.BlockSpec(w2.shape, lambda i: (0, 0)),
            pl.BlockSpec(b2.shape, lambda i: (0, 0)),
            pl.BlockSpec(w3.shape, lambda i: (0, 0)),
            pl.BlockSpec(b3.shape, lambda i: (0, 0)),
        ],
        out_specs=pl.BlockSpec((out_dim, tile_b), lambda i: (0, i)),
        compiler_params=pltpu.CompilerParams(
            # Batch tiles are independent -> shard across both TCs on v7x;
            # harmless no-op on single-TC v5e/v6e.
            dimension_semantics=("parallel",),
        ),
        cost_estimate=cost,
    )(xT, *consts)

    # Undo the layout transpose and drop the batch padding.
    return outT.T[:batch].astype(x.dtype)


def init_params(key, input_dim, output_dim):
    """Deterministic init mirroring the PyTorch module's __init__ distributions."""
    k1, k2, k3, k4 = jax.random.split(key, 4)

    def kaiming_uniform_relu(k, out_f, in_f):
        # torch kaiming_uniform_(nonlinearity='relu'): bound = sqrt(6 / fan_in)
        bound = math.sqrt(6.0 / in_f)
        return jax.random.uniform(k, (out_f, in_f), jnp.float32, -bound, bound)

    w1 = kaiming_uniform_relu(k1, 12, input_dim)
    w2 = kaiming_uniform_relu(k2, 6, 12)
    w3 = jax.random.uniform(k3, (output_dim, 6), jnp.float32, 0.0, 1.0)  # uniform_()
    b1 = jnp.zeros((12,), jnp.float32)
    b2 = jnp.zeros((6,), jnp.float32)
    b3 = jax.random.uniform(k4, (output_dim,), jnp.float32, 0.0, 1.0)    # uniform_()
    return {"w1": w1, "b1": b1, "w2": w2, "b2": b2, "w3": w3, "b3": b3}


def reference_forward(x, p):
    h1 = jnp.maximum(x @ p["w1"].T + p["b1"], 0.0)
    h2 = jnp.maximum(h1 @ p["w2"].T + p["b2"], 0.0)
    return h2 @ p["w3"].T + p["b3"]


if __name__ == "__main__":
    key = jax.random.PRNGKey(0)
    k_param, k_x, k_x2 = jax.random.split(key, 3)

    batch, input_dim, output_dim = 8, 32, 4
    params = init_params(k_param, input_dim, output_dim)
    x = jax.random.normal(k_x, (batch, input_dim), jnp.float32)
    ref = reference_forward(x, params)

    # Exact-dtype path (f32 MXU operands) — module semantics preserved.
    out_f32 = jax.block_until_ready(
        linear_nn_forward(x, params, matmul_dtype=jnp.float32))
    assert out_f32.shape == (batch, output_dim)
    assert jnp.allclose(out_f32, ref, atol=1e-4, rtol=1e-4)

    # Default bf16-operand path (halved HBM read traffic on v6e/v7x), f32 accum.
    out_bf16 = jax.block_until_ready(linear_nn_forward(x, params))
    assert out_bf16.shape == (batch, output_dim)
    assert jnp.allclose(out_bf16, ref, atol=5e-2, rtol=5e-2)

    # Multi-tile grid + ragged batch (exercises padding and the pipelined grid).
    x2 = jax.random.normal(k_x2, (300, input_dim), jnp.float32)
    out2 = jax.block_until_ready(linear_nn_forward(x2, params, tile_b=128))
    assert out2.shape == (300, output_dim)
    assert jnp.allclose(out2, reference_forward(x2, params), atol=5e-2, rtol=5e-2)

    print("KERNEL_OK")
</pallas_src>

<mosaic_0001>
module attributes {stable_mosaic.version = 11 : i64} {
  func.func @_mlp_kernel(%arg0: i32, %arg1: memref<32x128xf32, #tpu.memory_space<vmem>>, %arg2: memref<12x32xf32, #tpu.memory_space<vmem>>, %arg3: memref<12x1xf32, #tpu.memory_space<vmem>>, %arg4: memref<6x12xf32, #tpu.memory_space<vmem>>, %arg5: memref<6x1xf32, #tpu.memory_space<vmem>>, %arg6: memref<4x6xf32, #tpu.memory_space<vmem>>, %arg7: memref<4x1xf32, #tpu.memory_space<vmem>>, %arg8: memref<4x128xf32, #tpu.memory_space<vmem>>) attributes {dimension_semantics = [#tpu.dimension_semantics<parallel>], iteration_bounds = array<i64: 1>, scalar_prefetch = 0 : i64, scratch_operands = 0 : i64, tpu.core_type = #tpu.core_type<tc>, window_params = [{transform_indices = @transform_0, window_bounds = array<i64: 32, 128>}, {pipeline_mode = #tpu.pipeline_mode<synchronous>, transform_indices = @transform_1, window_bounds = array<i64: 12, 32>}, {pipeline_mode = #tpu.pipeline_mode<synchronous>, transform_indices = @transform_2, window_bounds = array<i64: 12, 1>}, {pipeline_mode = #tpu.pipeline_mode<synchronous>, transform_indices = @transform_3, window_bounds = array<i64: 6, 12>}, {pipeline_mode = #tpu.pipeline_mode<synchronous>, transform_indices = @transform_4, window_bounds = array<i64: 6, 1>}, {pipeline_mode = #tpu.pipeline_mode<synchronous>, transform_indices = @transform_5, window_bounds = array<i64: 4, 6>}, {pipeline_mode = #tpu.pipeline_mode<synchronous>, transform_indices = @transform_6, window_bounds = array<i64: 4, 1>}, {transform_indices = @transform_7, window_bounds = array<i64: 4, 128>}]} {
    %c0 = arith.constant 0 : index
    %c0_0 = arith.constant 0 : index
    %0 = vector.load %arg2[%c0, %c0_0] : memref<12x32xf32, #tpu.memory_space<vmem>>, vector<12x32xf32>
    %c0_1 = arith.constant 0 : index
    %c0_2 = arith.constant 0 : index
    %1 = vector.load %arg1[%c0_1, %c0_2] : memref<32x128xf32, #tpu.memory_space<vmem>>, vector<32x128xf32>
    %cst = arith.constant dense<0.000000e+00> : vector<12x128xf32>
    %2 = tpu.matmul %0, %1, %cst {dimension_numbers = #tpu.dot_dimension_numbers<[1], [0], [0], [1], [0, 0, 1, 1], [], []>} : vector<12x32xf32>, vector<32x128xf32>, vector<12x128xf32> -> vector<12x128xf32>
    %c0_3 = arith.constant 0 : index
    %c0_4 = arith.constant 0 : index
    %3 = vector.load %arg3[%c0_3, %c0_4] : memref<12x1xf32, #tpu.memory_space<vmem>>, vector<12x1xf32>
    %4 = vector.broadcast %3 : vector<12x1xf32> to vector<12x128xf32>
    %5 = arith.addf %2, %4 : vector<12x128xf32>
    %cst_5 = arith.constant 0.000000e+00 : f32
    %6 = vector.broadcast %cst_5 : f32 to vector<12x128xf32>
    %7 = arith.maximumf %5, %6 : vector<12x128xf32>
    %c0_6 = arith.constant 0 : index
    %c0_7 = arith.constant 0 : index
    %8 = vector.load %arg4[%c0_6, %c0_7] : memref<6x12xf32, #tpu.memory_space<vmem>>, vector<6x12xf32>
    %cst_8 = arith.constant dense<0.000000e+00> : vector<6x128xf32>
    %9 = tpu.matmul %8, %7, %cst_8 {dimension_numbers = #tpu.dot_dimension_numbers<[1], [0], [0], [1], [0, 0, 1, 1], [], []>} : vector<6x12xf32>, vector<12x128xf32>, vector<6x128xf32> -> vector<6x128xf32>
    %c0_9 = arith.constant 0 : index
    %c0_10 = arith.constant 0 : index
    %10 = vector.load %arg5[%c0_9, %c0_10] : memref<6x1xf32, #tpu.memory_space<vmem>>, vector<6x1xf32>
    %11 = vector.broadcast %10 : vector<6x1xf32> to vector<6x128xf32>
    %12 = arith.addf %9, %11 : vector<6x128xf32>
    %cst_11 = arith.constant 0.000000e+00 : f32
    %13 = vector.broadcast %cst_11 : f32 to vector<6x128xf32>
    %14 = arith.maximumf %12, %13 : vector<6x128xf32>
    %c0_12 = arith.constant 0 : index
    %c0_13 = arith.constant 0 : index
    %15 = vector.load %arg6[%c0_12, %c0_13] : memref<4x6xf32, #tpu.memory_space<vmem>>, vector<4x6xf32>
    %cst_14 = arith.constant dense<0.000000e+00> : vector<4x128xf32>
    %16 = tpu.matmul %15, %14, %cst_14 {dimension_numbers = #tpu.dot_dimension_numbers<[1], [0], [0], [1], [0, 0, 1, 1], [], []>} : vector<4x6xf32>, vector<6x128xf32>, vector<4x128xf32> -> vector<4x128xf32>
    %c0_15 = arith.constant 0 : index
    %c0_16 = arith.constant 0 : index
    %17 = vector.load %arg7[%c0_15, %c0_16] : memref<4x1xf32, #tpu.memory_space<vmem>>, vector<4x1xf32>
    %18 = vector.broadcast %17 : vector<4x1xf32> to vector<4x128xf32>
    %19 = arith.addf %16, %18 : vector<4x128xf32>
    %c0_17 = arith.constant 0 : index
    %c0_18 = arith.constant 0 : index
    %20 = vector.load %arg8[%c0_17, %c0_18] : memref<4x128xf32, #tpu.memory_space<vmem>>, vector<4x128xf32>
    tpu.vector_store %arg8[%c0_17, %c0_18], %19 {strides = array<i32>} : memref<4x128xf32, #tpu.memory_space<vmem>>, vector<4x128xf32>,
    return
  }
  func.func @transform_0(%arg0: i32) -> (i32, i32) {
    %c0_i32 = arith.constant 0 : i32
    %c0_i32_0 = arith.constant 0 : i32
    return %c0_i32, %arg0 : i32, i32
  }
  func.func @transform_1(%arg0: i32) -> (i32, i32) {
    %c0_i32 = arith.constant 0 : i32
    %c0_i32_0 = arith.constant 0 : i32
    %c0_i32_1 = arith.constant 0 : i32
    return %c0_i32, %c0_i32_0 : i32, i32
  }
  func.func @transform_2(%arg0: i32) -> (i32, i32) {
    %c0_i32 = arith.constant 0 : i32
    %c0_i32_0 = arith.constant 0 : i32
    %c0_i32_1 = arith.constant 0 : i32
    return %c0_i32, %c0_i32_0 : i32, i32
  }
  func.func @transform_3(%arg0: i32) -> (i32, i32) {
    %c0_i32 = arith.constant 0 : i32
    %c0_i32_0 = arith.constant 0 : i32
    %c0_i32_1 = arith.constant 0 : i32
    return %c0_i32, %c0_i32_0 : i32, i32
  }
  func.func @transform_4(%arg0: i32) -> (i32, i32) {
    %c0_i32 = arith.constant 0 : i32
    %c0_i32_0 = arith.constant 0 : i32
    %c0_i32_1 = arith.constant 0 : i32
    return %c0_i32, %c0_i32_0 : i32, i32
  }
  func.func @transform_5(%arg0: i32) -> (i32, i32) {
    %c0_i32 = arith.constant 0 : i32
    %c0_i32_0 = arith.constant 0 : i32
    %c0_i32_1 = arith.constant 0 : i32
    return %c0_i32, %c0_i32_0 : i32, i32
  }
  func.func @transform_6(%arg0: i32) -> (i32, i32) {
    %c0_i32 = arith.constant 0 : i32
    %c0_i32_0 = arith.constant 0 : i32
    %c0_i32_1 = arith.constant 0 : i32
    return %c0_i32, %c0_i32_0 : i32, i32
  }
  func.func @transform_7(%arg0: i32) -> (i32, i32) {
    %c0_i32 = arith.constant 0 : i32
    %c0_i32_0 = arith.constant 0 : i32
    return %c0_i32, %arg0 : i32, i32
  }
}

</mosaic_0001>

<bundles_post_ra>
// kernel: tpu_custom_call.1
= control target key start
LH: loop header
LB: loop body
LE: loop exit
PB: predicated region body
PF: predicated region fallthrough
CT: control target
= control target key end

     0   :  { %12 = vsyncpa [#allocation3], 0  ;;  %s542_s0 = inlined_call_operand.hbm [shape: f32[32,128], index: 0, kind: input, shape index: {}]   ;;  %s543_s1 = inlined_call_operand.vmem [shape: f32[12,32], index: 1, kind: input, shape index: {}]   ;;  %s544_s2 = inlined_call_operand.vmem [shape: f32[12,1], index: 2, kind: input, shape index: {}]   ;;  %s545_s3 = inlined_call_operand.vmem [shape: f32[6,12], index: 3, kind: input, shape index: {}]   ;;  %s546_s4 = inlined_call_operand.vmem [shape: f32[6,1], index: 4, kind: input, shape index: {}]   ;;  %s547_s5 = inlined_call_operand.vmem [shape: f32[4,6], index: 5, kind: input, shape index: {}]   ;;  %s548_s6 = inlined_call_operand.vmem [shape: f32[4,1], index: 6, kind: input, shape index: {}]   ;;  %s549_s7 = inlined_call_operand.hbm [shape: f32[4,128], index: 7, kind: output, shape index: {}]  }
   0x1   :  { %13 = vsyncpa [#allocation4], 0  ;;  %s441_s24 = smov [#allocation2]   ;;  %s393_s28 = scalar_lea.hbm %s542_s0, 512 }
   0x2   :  { %s19_s25 = sshll.u32 %s441_s24, 4  ;;  %p394_p0 = scmp.ne.s32.totalorder %s542_s0, %s393_s28  ;;  %s20_s25 = int_to_ptr.vmem [resolvable:$true] %s19_s25 }
   0x3   :  { %p397_p1 = scmp.lt.u32.totalorder %s393_s28, %s542_s0 }
   0x5   :  { %p399_p2 = pnand %p397_p1, %p394_p0 }
   0x7   :  { %402 = shalt.err (!%p399_p2)
}
   0x8   :  { %s403_s10 = scalar_lea.vmem %s20_s25, 512  ;;  %p408_p4 = scmp.lt.s32.totalorder %s20_s25, %s20_s25 }
   0x9   :  { %p404_p3 = scmp.ne.s32.totalorder %s20_s25, %s403_s10  ;;  %p409_p5 = scmp.lt.s32.totalorder %s403_s10, %s403_s10 }
   0xb   :  { %p410_p6 = por %p409_p5, %p408_p4 }
   0xd   :  { %p411_p7 = pnand %p410_p6, %p404_p3 }
   0xf   :  { %414 = shalt.err (!%p411_p7)
}
  0x10   :  { %s442_s11 = smov 128   ;;  %s443_s12 = smov 8  }
  0x11   :  { %25 = dma.hbm_to_vmem [thread:$0]  %s542_s0, 512, %s20_s25, [#allocation3], %s442_s11, %s442_s11, %s443_s12  }
  0x12   :  { %437 = dma.done.wait [#allocation3], 512  }
  0x13   :  { %438 = vsyncadd [#allocation3], 4294966784  ;;  %v444_v0 = vmov 0   ;;  %vm59_vm0 = vcmask 261120   ;;  %v43_v1 = vld [vmem:[#allocation2] sm:$0xff]  ;;  %v44_v2 = vld [vmem:[#allocation2 + $0x8] sm:$0xff] }
  0x14   :  { %391 = vset.pattern.permute.xlu0 %v444_v0  ;;  %392 = vset.pattern.permute.xlu1 %v444_v0  ;;  %v45_v3 = vld [vmem:[#allocation2 + $0x10] sm:$0xff]  ;;  %v370_v4 = vpack.c.bf16 %v44_v2, %v43_v1  ;;  %v46_v5 = vld [vmem:[#allocation2 + $0x18] sm:$0xff]  ;;  %v41_v6 = vld [vmem:[%s543_s1] sm:$0xff]  ;;  %v445_v11 = vmov 0.0|0.0   ;;  %vm446_vm1 = vmmov 0   ;;  %v447_v12 = vmov 0.0  }
  0x15   :  { %v374_v7 = vpack.c.bf16 %v46_v5, %v45_v3  ;;  %355 = vmatprep.mubr.msk.f32.mxu0 %vm59_vm0, %v41_v6  ;;  %v47_v8 = vld [vmem:[%s544_s2] sm:$0xff]  ;;  %v48_v9 = vld [vmem:[%s544_s2 + $0x8] sm:$0xf]  ;;  %378 = vmatprep.subr.bf16.mxu1 %v445_v11  ;;  %vm154_vm2 = vcmask 1043456   ;;  %vm448_vm3 = vmmov 1   ;;  %vm150_vm5 = vcmask 97280  }
  0x16   :  { %371 = vmatprep.subr.bf16.mxu0 %v370_v4  ;;  %51 = vperm.xlu0 %391, %v47_v8   ;;  %v42_v10 = vld [vmem:[%s543_s1 + $0x8] sm:$0xf]  ;;  %v144_v13 = vld [vmem:[%s546_s4] sm:$0x3f]  ;;  %vm380_vm4 = vmpackc.low %vm154_vm2, %vm448_vm3  ;;  %vm240_vm6 = vcmask 1045504   ;;  %vm236_vm7 = vcmask 48128  }
  0x17   :  { %373 = vmatpush3.bf16.msra.mxu0 %v370_v4  ;;  %362 = vmatprep.mubr.msk.f32.mxu1 %vm446_vm1, %v447_v12  ;;  %v230_v14 = vld [vmem:[%s548_s6] sm:$0xf]  ;;  %s449_s26 = smov [#allocation5]  }
  0x18   :  { %375 = vmatprep.subr.bf16.mxu0 %v374_v7  ;;  %147 = vperm.xlu1 %392, %v144_v13   ;;  %v143_v24 = vld [vmem:[%s545_s3] sm:$0x3f]  ;;  %s321_s3 = sshll.u32 %s449_s26, 4  ;;  %s322_s3 = int_to_ptr.vmem [resolvable:$true] %s321_s3 }
  0x19   :  { %v229_v30 = vld [vmem:[%s547_s5] sm:$0xf]  ;;  %s415_s27 = scalar_lea.vmem %s322_s3, 64  ;;  %p420_p9 = scmp.lt.s32.totalorder %s322_s3, %s322_s3 }
  0x1a   :  { %56 = vperm.xlu0 %391, %v48_v9   ;;  %p416_p8 = scmp.ne.s32.totalorder %s322_s3, %s415_s27  ;;  %p421_p10 = scmp.lt.s32.totalorder %s415_s27, %s415_s27 }
  0x1b   :  { %377 = vmatpush3.bf16.msra.mxu0 %v374_v7 }
  0x1c   :  { %233 = vperm.xlu1 %392, %v230_v14   ;;  %p422_p11 = por %p421_p10, %p420_p9 }
  0x1e   :  { %356 = vmatmul.mubr.msk.f32.vlgmr.msra.gmra.mrb[0].mxu0 %vm59_vm0, %v42_v10  ;;  %p423_p12 = pnand %p422_p11, %p416_p8 }
  0x95   :  { %v52_v15 = vpop.permute.xlu0 %51 }
  0x97   :  { %v148_v25 = vpop.permute.xlu1 %147 }
  0x99   :  { %v57_v16 = vpop.permute.xlu0 %56 }
  0x9b   :  { %v234_v31 = vpop.permute.xlu1 %233 }
  0xf1   :  { %v357_v17 = vpop.f32.mrb[0].mxu0 }
  0xf2   :  { %v138_v18 = vadd.f32 %v357_v17, %v57_v16  ;;  %v132_v19 = vpop.f32.mrb[1].mxu0 }
  0xf3   :  { %v133_v20 = vadd.f32 %v132_v19, %v52_v15 }
  0xf4   :  { %v142_v21 = vmax.f32 %v138_v18, 0.0 }
  0xf5   :  { %v141_v22 = vmax.f32 %v133_v20, 0.0 }
  0xf7   :  { %v379_v23 = vpack.c.bf16 %v142_v21, %v141_v22 }
  0xf9   :  { %381 = vmatpush3.bf16.msk.msra.mxu1 %vm380_vm4, %v379_v23 }
  0xfa   :  { %365 = vmatprep.subr.mxu1 %v447_v12 }
  0xfc   :  { %363 = vmatmul.mubr.msk.f32.vlgmr.msra.gmra.mrb[0].mxu1 %vm150_vm5, %v143_v24 }
  0xfd   :  { %367 = vmatprep.mubr.msk.f32.mxu1 %vm446_vm1, %v447_v12 }
 0x1cf   :  { %v224_v26 = vpop.f32.mrb[0].mxu1 }
 0x1d0   :  { %v225_v27 = vadd.f32 %v224_v26, %v148_v25  ;;  %v364_v28 = vpop.f32.mrb[1].mxu1 }
 0x1d2   :  { %v228_v29 = vmax.f32 %v225_v27, 0.0 }
 0x1d4   :  { %366 = vmatpush3.msk.msra.mxu1 %vm240_vm6, %v228_v29 }
 0x1d5   :  { %368 = vmatmul.mubr.msk.f32.vlgmr.msra.gmra.mrb[2].mxu1 %vm236_vm7, %v229_v30 }
 0x2a8   :  { %v310_v32 = vpop.f32.mrb[2].mxu1 }
 0x2a9   :  { %v311_v33 = vadd.f32 %v310_v32, %v234_v31  ;;  %v369_v34 = vpop.f32.mrb[3].mxu1 }
 0x2ab   :  { %314 = vst [vmem:[#allocation5] sm:$0xf] %v311_v33 }
 0x2ac   :  { %426 = shalt.err (!%p423_p12)
}
 0x2ad   :  { %s427_s29 = scalar_lea.hbm %s549_s7, 64 }
 0x2ae   :  { %p428_p13 = scmp.ne.s32.totalorder %s549_s7, %s427_s29  ;;  %p431_p0 = scmp.lt.u32.totalorder %s427_s29, %s549_s7 }
 0x2b0   :  { %p433_p1 = pnand %p431_p0, %p428_p13 }
 0x2b2   :  { %436 = shalt.err (!%p433_p1)
}
 0x2b3   :  { %324 = dma.vmem_to_hbm [thread:$0]  %s322_s3, 64, %s549_s7, [#allocation4]  }
 0x2b4   :  { %439 = dma.done.wait [#allocation4], 64  }
 0x2b5   :  { %440 = vsyncadd [#allocation4], 4294967232 }
 0x2b6   :  { %328 = vsyncpa [#allocation3], 1 }
 0x2b7   :  { %329 = vsyncpa [#allocation4], 1 }

</bundles_post_ra>
